<compile_context>
chip_gen: v7x
topology: tpu7x:2x2x1
jax: 0.10.0
libtpu: 0.0.40
codegen_flags: <defaults>
</compile_context>

<pallas_src>
import functools
import math

import jax
import jax.numpy as jnp
from jax.experimental import pallas as pl
from jax.experimental.pallas import tpu as pltpu


def _round_up(x, m):
    return ((x + m - 1) // m) * m


def _vmem_capacity_bytes():
    """Per-core VMEM capacity; conservative fallback if the query fails."""
    try:
        info = pltpu.get_tpu_info()
        cap = int(getattr(info, "vmem_capacity_bytes", 0))
        if cap > 0:
            return cap
    except Exception:
        pass
    return 64 << 20  # v7x per-TC VMEM; safe lower bound for all generations


def _lora_kernel(x_ref, a_ref, b_ref, o_ref, xa_ref, *, scale, cast_first_to_bf16):
    """One (row-tile, out-col-tile) grid step of scale * (x @ A @ B).

    xa = scale * (x @ A) is computed once per row tile (j == 0) and carried in
    VMEM scratch across all out_dim column tiles; the j grid axis is
    'arbitrary' so it iterates sequentially on one core and the carry is valid.
    """

    @pl.when(pl.program_id(1) == 0)
    def _():
        xv = x_ref[...]
        av = a_ref[...]
        if cast_first_to_bf16:
            # Optional (mainly v5e): keep the first matmul on the bf16 MXU
            # path even for f32 inputs; accumulation stays f32.
            xv = xv.astype(jnp.bfloat16)
            av = av.astype(jnp.bfloat16)
        xa = jnp.dot(xv, av, preferred_element_type=jnp.float32)
        # Scale the tiny [tm, rank] intermediate, not the [tm, out_dim] output.
        xa_ref[...] = (xa * jnp.float32(scale)).astype(xa_ref.dtype)

    o_ref[...] = jnp.dot(
        xa_ref[...], b_ref[...], preferred_element_type=jnp.float32
    ).astype(o_ref.dtype)


def _choose_tiles(M, in_dim, out_dim, rank, x_item, a_item, b_item, mid_item, budget):
    """Pick (tm, tn).  Prefer tn == out_dim (collapses the column grid) and
    size tm jointly from the VMEM budget, accounting for layout padding."""
    headroom = 2 << 20
    rank_lanes = _round_up(rank, 128)            # A / xa lane padding
    rank_subs = _round_up(rank, 16)              # B sublane padding
    in_lanes = _round_up(in_dim, 128)
    a_fixed = 2 * _round_up(in_dim, 16) * rank_lanes * a_item  # A (double-buffered)

    if M <= 8:
        tm_cap = max(M, 1)                       # full-extent row block
    else:
        tm_cap = min(2048, (M // 8) * 8)
    min_tm = min(256, tm_cap)

    # tn candidates: full out_dim first, then lane-dense multiples of 128.
    tn_cands = [out_dim]
    t = 2048
    while t >= 128:
        if t < out_dim:
            tn_cands.append(t)
        t //= 2

    fallback = None
    for tn in tn_cands:
        tn_lanes = _round_up(tn, 128)
        b_fixed = 2 * rank_subs * tn_lanes * b_item
        avail = budget - headroom - a_fixed - b_fixed
        if avail <= 0:
            continue
        per_row = 2 * in_lanes * x_item + 2 * tn_lanes * x_item + rank_lanes * mid_item
        tm_max = avail // per_row
        if M <= 8:
            if tm_max >= tm_cap:
                return int(tm_cap), int(tn)
            continue
        tm = min(tm_cap, (tm_max // 8) * 8)
        if tm >= min_tm:
            return int(tm), int(tn)
        if fallback is None and tm >= 8:
            fallback = (int(tm), int(tn))
    if fallback is not None:
        return fallback
    return (int(tm_cap) if M <= 8 else 8,
            out_dim if out_dim < 128 else 128)


def lora_forward(x, lora_A, lora_B, *, alpha=1.0, rank=None, tm=None, tn=None,
                 cast_first_matmul_to_bf16=False, force_pallas=False):
    """scale * (x @ lora_A @ lora_B) via a Pallas TPU kernel.

    x: [..., in_dim], lora_A: [in_dim, rank], lora_B: [rank, out_dim].
    Returns [..., out_dim] in x's dtype.
    """
    in_dim, r = lora_A.shape
    r_b, out_dim = lora_B.shape
    assert r == r_b, "lora_A / lora_B rank mismatch"
    if rank is not None:
        assert rank == r
    assert x.shape[-1] == in_dim
    scale = float(alpha) / float(r)

    lead = x.shape[:-1]
    M = int(math.prod(lead)) if lead else 1
    x2 = x.reshape(M, in_dim)

    # Tiny problems: a standalone pallas_call is pure per-step overhead; use XLA.
    if not force_pallas and (M * out_dim <= 128 * 128):
        out = scale * (x2.astype(jnp.float32) @ lora_A.astype(jnp.float32)
                       @ lora_B.astype(jnp.float32))
        return out.astype(x.dtype).reshape(*lead, out_dim)

    x_item = jnp.dtype(x.dtype).itemsize
    a_item = jnp.dtype(lora_A.dtype).itemsize
    b_item = jnp.dtype(lora_B.dtype).itemsize

    # Keep the second matmul on the bf16 MXU path when everything is bf16.
    cast_mid_to_bf16 = (x.dtype == jnp.bfloat16) and (lora_B.dtype == jnp.bfloat16)
    mid_dtype = jnp.bfloat16 if cast_mid_to_bf16 else jnp.float32
    mid_item = jnp.dtype(mid_dtype).itemsize

    # Generation-aware VMEM budget (64 MiB/TC on v7x, 128 MiB on v5e/v6e).
    vmem_cap = _vmem_capacity_bytes()
    budget = min(int(0.70 * vmem_cap), 96 << 20)

    auto_tm, auto_tn = _choose_tiles(M, in_dim, out_dim, r,
                                     x_item, a_item, b_item, mid_item, budget)
    tn = int(auto_tn if tn is None else tn)
    tm = int(auto_tm if tm is None else tm)
    # Sanitize: tn lane-dense (multiple of 128) unless full-extent; tm a
    # multiple of 8 no larger than the batch (partial last block is masked).
    if tn != out_dim:
        if out_dim < 128:
            tn = out_dim
        else:
            tn = min(max(128, (tn // 128) * 128), _round_up(out_dim, 128))
    if M > 8:
        tm = min(max(8, (tm // 8) * 8), (M // 8) * 8)
    else:
        tm = M

    grid = (pl.cdiv(M, tm), pl.cdiv(out_dim, tn))

    kernel = functools.partial(_lora_kernel, scale=scale,
                               cast_first_to_bf16=bool(cast_first_matmul_to_bf16))

    # VMEM-limit estimate with layout padding + headroom for compiler scratch.
    rank_lanes = _round_up(r, 128)
    vmem_est = (2 * tm * _round_up(in_dim, 128) * x_item           # x tiles
                + 2 * tm * _round_up(tn, 128) * x_item             # out tiles
                + 2 * _round_up(in_dim, 16) * rank_lanes * a_item  # A (padded)
                + 2 * _round_up(r, 16) * _round_up(tn, 128) * b_item  # B (padded)
                + _round_up(tm, 16) * rank_lanes * mid_item)       # xa scratch
    vmem_limit = int(min(max(vmem_est + (4 << 20), 16 << 20),
                         max(budget + (8 << 20), 16 << 20)))

    out = pl.pallas_call(
        kernel,
        out_shape=jax.ShapeDtypeStruct((M, out_dim), x.dtype),
        grid_spec=pltpu.PrefetchScalarGridSpec(
            num_scalar_prefetch=0,
            grid=grid,
            in_specs=[
                pl.BlockSpec((tm, in_dim), lambda i, j: (i, 0)),   # x row tile
                pl.BlockSpec((in_dim, r), lambda i, j: (0, 0)),    # A (resident)
                pl.BlockSpec((r, tn), lambda i, j: (0, j)),        # B column tile
            ],
            out_specs=pl.BlockSpec((tm, tn), lambda i, j: (i, j)),
            scratch_shapes=[pltpu.VMEM((tm, r), mid_dtype)],       # xa carry
        ),
        compiler_params=pltpu.CompilerParams(
            # Rows shard across cores; the column axis must be 'arbitrary' so
            # the xa scratch-carry is valid and both v7x cores don't duplicate
            # the dominant x DMA stream.
            dimension_semantics=("parallel", "arbitrary"),
            vmem_limit_bytes=vmem_limit,
        ),
    )(x2, lora_A, lora_B)

    return out.reshape(*lead, out_dim)


if __name__ == "__main__":
    key = jax.random.PRNGKey(0)

    # Case 1: tiny shape consistent with the module (batch=2, seq=8, hidden=32).
    B1, S1, in1, out1, rank1, alpha1 = 2, 8, 32, 32, 4, 1.0
    kx, ka, kb = jax.random.split(key, 3)
    x1 = jax.random.normal(kx, (B1, S1, in1), dtype=jnp.float32)
    # Module init: lora_A ~ Normal(0, 1/rank); lora_B would be zeros -- use a
    # small nonzero B so the kernel path is exercised numerically.
    A1 = (1.0 / rank1) * jax.random.normal(ka, (in1, rank1), dtype=jnp.float32)
    B1w = 0.01 * jax.random.normal(kb, (rank1, out1), dtype=jnp.float32)
    o1 = jax.block_until_ready(
        lora_forward(x1, A1, B1w, alpha=alpha1, rank=rank1, force_pallas=True))
    r1 = (alpha1 / rank1) * (x1 @ A1 @ B1w)
    assert o1.shape == (B1, S1, out1)
    assert jnp.allclose(o1, r1, atol=1e-5, rtol=1e-5), "case1 mismatch"

    # Case 2: ragged row count (M % tm != 0) via masked partial blocks,
    # single column tile (tn == out_dim collapses the column grid).
    M2, in2, out2, rank2 = 300, 256, 384, 8
    k1, k2, k3 = jax.random.split(jax.random.PRNGKey(1), 3)
    x2 = jax.random.normal(k1, (M2, in2), dtype=jnp.float32)
    A2 = (1.0 / rank2) * jax.random.normal(k2, (in2, rank2), dtype=jnp.float32)
    B2 = 0.02 * jax.random.normal(k3, (rank2, out2), dtype=jnp.float32)
    o2 = jax.block_until_ready(lora_forward(x2, A2, B2, alpha=2.0, rank=rank2))
    r2 = (2.0 / rank2) * (x2 @ A2 @ B2)
    assert o2.shape == (M2, out2)
    assert jnp.allclose(o2, r2, atol=1e-4, rtol=1e-4), "case2 mismatch"

    # Case 3: forced multi-column grid exercising the xa scratch-carry (j > 0).
    M3, in3, out3, rank3 = 128, 256, 512, 4
    k4, k5, k6 = jax.random.split(jax.random.PRNGKey(2), 3)
    x3 = jax.random.normal(k4, (M3, in3), dtype=jnp.float32)
    A3 = (1.0 / rank3) * jax.random.normal(k5, (in3, rank3), dtype=jnp.float32)
    B3 = 0.02 * jax.random.normal(k6, (rank3, out3), dtype=jnp.float32)
    o3 = jax.block_until_ready(
        lora_forward(x3, A3, B3, alpha=1.0, rank=rank3, tm=64, tn=128))
    r3 = (1.0 / rank3) * (x3 @ A3 @ B3)
    assert o3.shape == (M3, out3)
    assert jnp.allclose(o3, r3, atol=1e-4, rtol=1e-4), "case3 mismatch"

    # Case 4: bf16 path (bf16 MXU operands for both matmuls, f32 accumulation).
    xb = x3.astype(jnp.bfloat16)
    Ab = A3.astype(jnp.bfloat16)
    Bb = B3.astype(jnp.bfloat16)
    ob = jax.block_until_ready(lora_forward(xb, Ab, Bb, alpha=1.0, rank=rank3))
    rb = (1.0 / rank3) * (xb.astype(jnp.float32) @ Ab.astype(jnp.float32)
                          @ Bb.astype(jnp.float32))
    assert ob.shape == (M3, out3)
    assert jnp.allclose(ob.astype(jnp.float32), rb, atol=5e-2, rtol=5e-2), "case4 mismatch"

    print("KERNEL_OK")
</pallas_src>

<mosaic_0001>
module attributes {stable_mosaic.version = 11 : i64} {
  func.func @_lora_kernel(%arg0: i32, %arg1: i32, %arg2: memref<16x32xf32, #tpu.memory_space<vmem>>, %arg3: memref<32x4xf32, #tpu.memory_space<vmem>>, %arg4: memref<4x32xf32, #tpu.memory_space<vmem>>, %arg5: memref<16x32xf32, #tpu.memory_space<vmem>>, %arg6: memref<16x4xf32, #tpu.memory_space<vmem>>) attributes {dimension_semantics = [#tpu.dimension_semantics<parallel>, #tpu.dimension_semantics<arbitrary>], iteration_bounds = array<i64: 1, 1>, scalar_prefetch = 0 : i64, scratch_operands = 1 : i64, tpu.core_type = #tpu.core_type<tc>, window_params = [{transform_indices = @transform_0, window_bounds = array<i64: 16, 32>}, {pipeline_mode = #tpu.pipeline_mode<synchronous>, transform_indices = @transform_1, window_bounds = array<i64: 32, 4>}, {transform_indices = @transform_2, window_bounds = array<i64: 4, 32>}, {transform_indices = @transform_3, window_bounds = array<i64: 16, 32>}]} {
    %c0_i32 = arith.constant 0 : i32
    %0 = arith.cmpi eq, %arg1, %c0_i32 : i32
    %1 = arith.extui %0 : i1 to i32
    %c0_i32_0 = arith.constant 0 : i32
    %2 = arith.cmpi ne, %1, %c0_i32_0 : i32
    scf.if %2 {
      %c0_6 = arith.constant 0 : index
      %c0_7 = arith.constant 0 : index
      %7 = vector.load %arg2[%c0_6, %c0_7] : memref<16x32xf32, #tpu.memory_space<vmem>>, vector<16x32xf32>
      %c0_8 = arith.constant 0 : index
      %c0_9 = arith.constant 0 : index
      %8 = vector.load %arg3[%c0_8, %c0_9] : memref<32x4xf32, #tpu.memory_space<vmem>>, vector<32x4xf32>
      %cst_10 = arith.constant dense<0.000000e+00> : vector<16x4xf32>
      %9 = tpu.matmul %7, %8, %cst_10 {dimension_numbers = #tpu.dot_dimension_numbers<[1], [0], [0], [1], [0, 0, 1, 1], [], []>} : vector<16x32xf32>, vector<32x4xf32>, vector<16x4xf32> -> vector<16x4xf32>
      %cst_11 = arith.constant 2.500000e-01 : f32
      %10 = vector.broadcast %cst_11 : f32 to vector<16x4xf32>
      %11 = arith.mulf %9, %10 : vector<16x4xf32>
      %c0_12 = arith.constant 0 : index
      %c0_13 = arith.constant 0 : index
      %12 = vector.load %arg6[%c0_12, %c0_13] : memref<16x4xf32, #tpu.memory_space<vmem>>, vector<16x4xf32>
      tpu.vector_store %arg6[%c0_12, %c0_13], %11 {strides = array<i32>} : memref<16x4xf32, #tpu.memory_space<vmem>>, vector<16x4xf32>,
    } else {
    }
    %c0 = arith.constant 0 : index
    %c0_1 = arith.constant 0 : index
    %3 = vector.load %arg6[%c0, %c0_1] : memref<16x4xf32, #tpu.memory_space<vmem>>, vector<16x4xf32>
    %c0_2 = arith.constant 0 : index
    %c0_3 = arith.constant 0 : index
    %4 = vector.load %arg4[%c0_2, %c0_3] : memref<4x32xf32, #tpu.memory_space<vmem>>, vector<4x32xf32>
    %cst = arith.constant dense<0.000000e+00> : vector<16x32xf32>
    %5 = tpu.matmul %3, %4, %cst {dimension_numbers = #tpu.dot_dimension_numbers<[1], [0], [0], [1], [0, 0, 1, 1], [], []>} : vector<16x4xf32>, vector<4x32xf32>, vector<16x32xf32> -> vector<16x32xf32>
    %c0_4 = arith.constant 0 : index
    %c0_5 = arith.constant 0 : index
    %6 = vector.load %arg5[%c0_4, %c0_5] : memref<16x32xf32, #tpu.memory_space<vmem>>, vector<16x32xf32>
    tpu.vector_store %arg5[%c0_4, %c0_5], %5 {strides = array<i32>} : memref<16x32xf32, #tpu.memory_space<vmem>>, vector<16x32xf32>,
    return
  }
  func.func @transform_0(%arg0: i32, %arg1: i32) -> (i32, i32) {
    %c0_i32 = arith.constant 0 : i32
    %c0_i32_0 = arith.constant 0 : i32
    return %arg0, %c0_i32 : i32, i32
  }
  func.func @transform_1(%arg0: i32, %arg1: i32) -> (i32, i32) {
    %c0_i32 = arith.constant 0 : i32
    %c0_i32_0 = arith.constant 0 : i32
    %c0_i32_1 = arith.constant 0 : i32
    return %c0_i32, %c0_i32_0 : i32, i32
  }
  func.func @transform_2(%arg0: i32, %arg1: i32) -> (i32, i32) {
    %c0_i32 = arith.constant 0 : i32
    %c0_i32_0 = arith.constant 0 : i32
    return %c0_i32, %arg1 : i32, i32
  }
  func.func @transform_3(%arg0: i32, %arg1: i32) -> (i32, i32) {
    %c0_i32 = arith.constant 0 : i32
    return %arg0, %arg1 : i32, i32
  }
}

</mosaic_0001>

<bundles_post_ra>
// kernel: tpu_custom_call.1
= control target key start
LH: loop header
LB: loop body
LE: loop exit
PB: predicated region body
PF: predicated region fallthrough
CT: control target
= control target key end

     0   :  { %vm25_vm0 = vcmask 261120   ;;  %s345_s0 = inlined_call_operand.vmem [shape: f32[16,32], index: 0, kind: input, shape index: {}]   ;;  %s346_s1 = inlined_call_operand.vmem [shape: f32[32,4], index: 1, kind: input, shape index: {}]   ;;  %s347_s2 = inlined_call_operand.vmem [shape: f32[4,32], index: 2, kind: input, shape index: {}]   ;;  %s348_s3 = inlined_call_operand.hbm [shape: f32[16,32], index: 3, kind: output, shape index: {}]  }
   0x1   :  { %v21_v0 = vld [vmem:[%s346_s1] sm:$0xff]  ;;  %v22_v1 = vld [vmem:[%s346_s1 + $0x8] sm:$0xff]  ;;  %v23_v2 = vld [vmem:[%s346_s1 + $0x10] sm:$0xff] }
   0x2   :  { %v250_v3 = vpack.c.bf16 %v22_v1, %v21_v0  ;;  %v24_v4 = vld [vmem:[%s346_s1 + $0x18] sm:$0xff]  ;;  %v19_v5 = vld [vmem:[%s345_s0] sm:$0xff] }
   0x3   :  { %v254_v6 = vpack.c.bf16 %v24_v4, %v23_v2  ;;  %242 = vmatprep.mubr.msk.f32.mxu0 %vm25_vm0, %v19_v5 }
   0x4   :  { %8 = vsyncpa [#allocation4], 0  ;;  %251 = vmatprep.subr.bf16.mxu0 %v250_v3  ;;  %v20_v7 = vld [vmem:[%s345_s0 + $0x8] sm:$0xff]  ;;  %v114_v8 = vld [vmem:[%s347_s2] sm:$0xf]  ;;  %vm122_vm1 = vcmask 1043456  }
   0x5   :  { %253 = vmatpush3.bf16.msra.mxu0 %v250_v3  ;;  %245 = vmatprep.subr.msk.mxu1 %vm122_vm1, %v114_v8  ;;  %vm109_vm2 = vcmask 31744   ;;  %s285_s0 = smov [#allocation3]  }
   0x6   :  { %255 = vmatprep.subr.bf16.mxu0 %v254_v6  ;;  %246 = vmatpush3.msk.msra.mxu1 %vm122_vm1, %v114_v8  ;;  %s209_s25 = sshll.u32 %s285_s0, 4  ;;  %s210_s25 = int_to_ptr.vmem [resolvable:$true] %s209_s25 }
   0x7   :  { %s261_s2 = scalar_lea.vmem %s210_s25, 256  ;;  %p266_p1 = scmp.lt.s32.totalorder %s210_s25, %s210_s25 }
   0x8   :  { %p262_p0 = scmp.ne.s32.totalorder %s210_s25, %s261_s2  ;;  %p267_p2 = scmp.lt.s32.totalorder %s261_s2, %s261_s2 }
   0x9   :  { %257 = vmatpush3.bf16.msra.mxu0 %v254_v6 }
   0xa   :  { %p268_p3 = por %p267_p2, %p266_p1 }
   0xc   :  { %243 = vmatmul.mubr.msk.f32.vlgmr.msra.gmra.mrb[0].mxu0 %vm25_vm0, %v20_v7  ;;  %p269_p4 = pnand %p268_p3, %p262_p0 }
  0xdf   :  { %v244_v9 = vpop.f32.mrb[0].mxu0 }
  0xe0   :  { %v108_v10 = vmul.f32 0.25, %v244_v9  ;;  %v98_v11 = vpop.f32.mrb[1].mxu0 }
  0xe1   :  { %v107_v12 = vmul.f32 0.25, %v98_v11 }
  0xe2   :  { %111 = vst.msk [vmem:[#allocation2 + $0x8] sm:$0xff] %vm109_vm2, %v108_v10 }
  0xe3   :  { %110 = vst.msk [vmem:[#allocation2] sm:$0xff] %vm109_vm2, %v107_v12 }
  0xe9   :  { %v113_v14 = vld [vmem:[#allocation2 + $0x8] sm:$0xff] }
  0xea   :  { %v112_v13 = vld [vmem:[#allocation2] sm:$0xff] }
  0xeb   :  { %247 = vmatprep.mubr.msk.f32.mxu1 %vm109_vm2, %v112_v13 }
  0xec   :  { %248 = vmatmul.mubr.msk.f32.vlgmr.msra.gmra.mrb[0].mxu1 %vm109_vm2, %v113_v14 }
 0x1bf   :  { %v249_v15 = vpop.f32.mrb[0].mxu1 }
 0x1c0   :  { %203 = vst.msk [vmem:[#allocation3 + $0x8] sm:$0xff] %vm25_vm0, %v249_v15  ;;  %v192_v16 = vpop.f32.mrb[1].mxu1 }
 0x1c1   :  { %202 = vst.msk [vmem:[#allocation3] sm:$0xff] %vm25_vm0, %v192_v16 }
 0x1c2   :  { %272 = shalt.err (!%p269_p4)
}
 0x1c3   :  { %s273_s28 = scalar_lea.hbm %s348_s3, 256 }
 0x1c4   :  { %p274_p5 = scmp.ne.s32.totalorder %s348_s3, %s273_s28  ;;  %p277_p6 = scmp.lt.u32.totalorder %s273_s28, %s348_s3 }
 0x1c6   :  { %p279_p7 = pnand %p277_p6, %p274_p5 }
 0x1c8   :  { %282 = shalt.err (!%p279_p7)
}
 0x1c9   :  { %s286_s6 = smov 128   ;;  %s287_s7 = smov 8  }
 0x1ca   :  { %215 = dma.vmem_to_hbm [thread:$0]  %s210_s25, 256, %s348_s3, [#allocation4], %s286_s6, %s286_s6, %s287_s7  }
 0x1cb   :  { %283 = dma.done.wait [#allocation4], 256  }
 0x1cc   :  { %284 = vsyncadd [#allocation4], 4294967040 }
 0x1cd   :  { %219 = vsyncpa [#allocation4], 1 }

</bundles_post_ra>
